<compile_context>
chip_gen: v5e
topology: v5e:2x2
jax: 0.10.0
libtpu: 0.0.40
codegen_flags: <defaults>
</compile_context>

<pallas_src>
import numpy as np
import jax
import jax.numpy as jnp
from jax.experimental import pallas as pl
from jax.experimental.pallas import tpu as pltpu

ALPHA = 0.5          # DirectionalGPSLoss.alpha
BETA = 0.5           # DirectionalGPSLoss.beta
X_BIAS = 0.3         # GPSLoss.x_bias
Y_BIAS = 0.7         # GPSLoss.y_bias
HUBER_DELTA = 1.0    # torch.nn.HuberLoss default delta, reduction='mean'
PI = float(np.pi)
TWO_PI = float(2.0 * np.pi)

LANES = 128
SUBLANES = 8


def _round_up(x, m):
    return ((x + m - 1) // m) * m


def _huber(diff):
    ad = jnp.abs(diff)
    return jnp.where(ad < HUBER_DELTA,
                     0.5 * diff * diff,
                     HUBER_DELTA * (ad - 0.5 * HUBER_DELTA))


def _directional_gps_loss_kernel(data_ref, out_ref, acc_ref):
    """One grid step processes a (4, tm, 128) slab.

    data_ref rows: 0 = pred_x, 1 = pred_y, 2 = target_x, 3 = target_y.
    Grid: (num_cores ["parallel"], tiles_per_core ["arbitrary"]).
    acc_ref: (3, 8, 128) f32 partial sums (angle, huber_x, huber_y), carried
    across the sequential tile axis. The zero-padded tail contributes exactly 0
    (huber(0-0)=0 and |atan2(+0,+0)|=+0), so no per-tile validity mask is needed.
    """
    i = pl.program_id(1)
    tm = data_ref.shape[1]

    @pl.when(i == 0)
    def _init():
        acc_ref[...] = jnp.zeros_like(acc_ref)

    px = data_ref[0]
    py = data_ref[1]
    tx = data_ref[2]
    ty = data_ref[3]

    # Directional term: |atan2(cross, dot)| equals the wrapped
    # |pred_angle - target_angle| in [0, pi] for nonzero vectors, so one atan2
    # per element replaces two atan2 + remainder(2*pi) + wrap select.
    # Notes: (a) exactly-(0,0) pred or target vectors can differ from the torch
    # two-atan2 form (degenerate atan2(0,0)); (b) cross/dot products assume
    # coordinate magnitudes far below f32 overflow — the torch module itself
    # warns above 1e6, i.e. products <= ~1e12, well inside f32 range.
    cross = py * tx - px * ty
    dot = px * tx + py * ty
    ang = jnp.abs(jnp.arctan2(cross, dot))
    # TODO(synk): if a bundle dump shows the generic arctan2 expansion saturating
    # VALU on v7x, hand-roll atan2 (pl.reciprocal(approx=True) + minimax poly) to
    # push the divide onto the otherwise-idle EUP slot.

    hx = _huber(px - tx)
    hy = _huber(py - ty)

    # Sublane-aligned partial reduction: pure VPU vreg adds; the single
    # cross-lane reduce happens once, outside the kernel, on the tiny partials.
    r8 = tm // SUBLANES
    acc_ref[0] += jnp.sum(ang.reshape(r8, SUBLANES, LANES), axis=0)
    acc_ref[1] += jnp.sum(hx.reshape(r8, SUBLANES, LANES), axis=0)
    acc_ref[2] += jnp.sum(hy.reshape(r8, SUBLANES, LANES), axis=0)

    @pl.when(i == pl.num_programs(1) - 1)
    def _finalize():
        # Per-core weighted (8,128) partial; final sum + /N happens outside.
        out_ref[0] = (BETA * acc_ref[0]
                      + (ALPHA * X_BIAS) * acc_ref[1]
                      + (ALPHA * Y_BIAS) * acc_ref[2])


def _directional_gps_loss_ref(pred, target):
    """Pure-jnp reference mirroring the PyTorch forward (validation / tiny-N
    fast path where pallas_call launch overhead would dominate)."""
    pa = jnp.arctan2(pred[:, 1], pred[:, 0])
    ta = jnp.arctan2(target[:, 1], target[:, 0])
    d = jnp.abs(pa - ta)
    d = jnp.mod(d, TWO_PI)
    d = jnp.where(d > PI, TWO_PI - d, d)
    angle_diff = jnp.mean(d)

    error_loss = (X_BIAS * jnp.mean(_huber(pred[:, 0] - target[:, 0]))
                  + Y_BIAS * jnp.mean(_huber(pred[:, 1] - target[:, 1])))
    return ALPHA * error_loss + BETA * angle_diff


def directional_gps_loss(pred, target, *, tile_rows=2048, use_pallas=True):
    """pred, target: (N, 2) arrays — same convention as the PyTorch module."""
    # TODO(synk): the NaN / Inf / large-magnitude diagnostic print statements in
    # the PyTorch forward have no effect on the returned value; not replicated.
    pred = jnp.asarray(pred, jnp.float32)
    target = jnp.asarray(target, jnp.float32)
    n = pred.shape[0]

    if not use_pallas:
        return _directional_gps_loss_ref(pred, target)

    rows = max(1, pl.cdiv(n, LANES))

    # Tile sizing: large tiles (amortize ~0.35 us/grid-step), balanced so the
    # round-up padding waste stays small, and a leading size-2 "parallel" axis
    # so v7x spreads tiles across both TensorCores (no-op on 1-TC v5e/v6e).
    num_cores = 2 if rows >= 2 * SUBLANES else 1
    max_tm = _round_up(min(int(tile_rows), rows), SUBLANES)
    n_tiles = max(pl.cdiv(rows, max_tm), num_cores)
    n_tiles = _round_up(n_tiles, num_cores)
    tm = _round_up(pl.cdiv(rows, n_tiles), SUBLANES)   # balanced tile size
    rows_padded = tm * n_tiles
    tiles_per_core = n_tiles // num_cores
    total = rows_padded * LANES

    # Lane-dense (4, R, 128) slab: pred_x, pred_y, target_x, target_y.
    # TODO(synk): this repack is one extra HBM round trip (~3x the kernel's
    # intrinsic 16 B/pair, dominant on HBM-bound v5e). For repeated calls keep
    # the slab layout upstream, or try CompilerParams(allow_input_fusion=...) so
    # XLA fuses the producer into the kernel's input DMA; kept as an explicit
    # single fusion here for portability/robustness.
    def to_slab(v):  # (N,) -> zero-padded (rows_padded, 128)
        return jnp.pad(v, (0, total - n)).reshape(rows_padded, LANES)

    data = jnp.stack([to_slab(pred[:, 0]), to_slab(pred[:, 1]),
                      to_slab(target[:, 0]), to_slab(target[:, 1])])

    partials = pl.pallas_call(
        _directional_gps_loss_kernel,
        out_shape=jax.ShapeDtypeStruct((num_cores, SUBLANES, LANES), jnp.float32),
        grid=(num_cores, tiles_per_core),
        in_specs=[pl.BlockSpec((4, tm, LANES),
                               lambda c, i: (0, c * tiles_per_core + i, 0))],
        out_specs=pl.BlockSpec((1, SUBLANES, LANES), lambda c, i: (c, 0, 0)),
        scratch_shapes=[pltpu.VMEM((3, SUBLANES, LANES), jnp.float32)],
        compiler_params=pltpu.CompilerParams(
            dimension_semantics=("parallel", "arbitrary"),
            vmem_limit_bytes=32 * 1024 * 1024),
    )(data)

    # Tiny (num_cores*8*128)-element cross-lane reduce + mean normalization.
    return jnp.sum(partials) * jnp.float32(1.0 / n)


if __name__ == "__main__":
    key = jax.random.PRNGKey(0)
    k1, k2 = jax.random.split(key)
    # Small shape consistent with the module: batch of 8 GPS (x, y) pairs.
    pred = jax.random.normal(k1, (8, 2), dtype=jnp.float32)
    target = jax.random.normal(k2, (8, 2), dtype=jnp.float32)

    loss = directional_gps_loss(pred, target)
    jax.block_until_ready(loss)

    ref = _directional_gps_loss_ref(pred, target)
    assert jnp.allclose(loss, ref, rtol=1e-3, atol=1e-3), (loss, ref)
    print("KERNEL_OK")
</pallas_src>

<mosaic_0001>
module attributes {stable_mosaic.version = 11 : i64} {
  func.func @_directional_gps_loss_kernel(%arg0: i32, %arg1: i32, %arg2: memref<4x8x128xf32, #tpu.memory_space<vmem>>, %arg3: memref<1x8x128xf32, #tpu.memory_space<vmem>>, %arg4: memref<3x8x128xf32, #tpu.memory_space<vmem>>) attributes {dimension_semantics = [#tpu.dimension_semantics<parallel>, #tpu.dimension_semantics<arbitrary>], iteration_bounds = array<i64: 1, 1>, scalar_prefetch = 0 : i64, scratch_operands = 1 : i64, tpu.core_type = #tpu.core_type<tc>, window_params = [{transform_indices = @transform_0, window_bounds = array<i64: 4, 8, 128>}, {transform_indices = @transform_1, window_bounds = array<i64: 1, 8, 128>}]} {
    %c0_i32 = arith.constant 0 : i32
    %0 = arith.cmpi eq, %arg1, %c0_i32 : i32
    %1 = arith.extui %0 : i1 to i32
    %c0_i32_0 = arith.constant 0 : i32
    %2 = arith.cmpi ne, %1, %c0_i32_0 : i32
    scf.if %2 {
      %cst_39 = arith.constant 0.000000e+00 : f32
      %70 = vector.broadcast %cst_39 : f32 to vector<3x8x128xf32>
      %c0_40 = arith.constant 0 : index
      %c0_41 = arith.constant 0 : index
      %c0_42 = arith.constant 0 : index
      %71 = vector.load %arg4[%c0_40, %c0_41, %c0_42] : memref<3x8x128xf32, #tpu.memory_space<vmem>>, vector<3x8x128xf32>
      tpu.vector_store %arg4[%c0_40, %c0_41, %c0_42], %70 {strides = array<i32>} : memref<3x8x128xf32, #tpu.memory_space<vmem>>, vector<3x8x128xf32>,
    } else {
    }
    %c0 = arith.constant 0 : index
    %c0_1 = arith.constant 0 : index
    %c0_2 = arith.constant 0 : index
    %3 = vector.load %arg2[%c0, %c0_1, %c0_2] : memref<4x8x128xf32, #tpu.memory_space<vmem>>, vector<1x8x128xf32>
    %4 = vector.shape_cast %3 : vector<1x8x128xf32> to vector<8x128xf32>
    %c1 = arith.constant 1 : index
    %c0_3 = arith.constant 0 : index
    %c0_4 = arith.constant 0 : index
    %5 = vector.load %arg2[%c1, %c0_3, %c0_4] : memref<4x8x128xf32, #tpu.memory_space<vmem>>, vector<1x8x128xf32>
    %6 = vector.shape_cast %5 : vector<1x8x128xf32> to vector<8x128xf32>
    %c2 = arith.constant 2 : index
    %c0_5 = arith.constant 0 : index
    %c0_6 = arith.constant 0 : index
    %7 = vector.load %arg2[%c2, %c0_5, %c0_6] : memref<4x8x128xf32, #tpu.memory_space<vmem>>, vector<1x8x128xf32>
    %8 = vector.shape_cast %7 : vector<1x8x128xf32> to vector<8x128xf32>
    %c3 = arith.constant 3 : index
    %c0_7 = arith.constant 0 : index
    %c0_8 = arith.constant 0 : index
    %9 = vector.load %arg2[%c3, %c0_7, %c0_8] : memref<4x8x128xf32, #tpu.memory_space<vmem>>, vector<1x8x128xf32>
    %10 = vector.shape_cast %9 : vector<1x8x128xf32> to vector<8x128xf32>
    %11 = arith.mulf %6, %8 : vector<8x128xf32>
    %12 = arith.mulf %4, %10 : vector<8x128xf32>
    %13 = arith.subf %11, %12 : vector<8x128xf32>
    %14 = arith.mulf %4, %8 : vector<8x128xf32>
    %15 = arith.mulf %6, %10 : vector<8x128xf32>
    %16 = arith.addf %14, %15 : vector<8x128xf32>
    %17 = math.atan2 %13, %16 : vector<8x128xf32>
    %18 = math.absf %17 : vector<8x128xf32>
    %19 = arith.subf %4, %8 : vector<8x128xf32>
    %20 = math.absf %19 : vector<8x128xf32>
    %cst = arith.constant 1.000000e+00 : f32
    %21 = vector.broadcast %cst : f32 to vector<8x128xf32>
    %22 = arith.cmpf olt, %20, %21 : vector<8x128xf32>
    %cst_9 = arith.constant 5.000000e-01 : f32
    %23 = vector.broadcast %cst_9 : f32 to vector<8x128xf32>
    %24 = arith.mulf %23, %19 : vector<8x128xf32>
    %25 = arith.mulf %24, %19 : vector<8x128xf32>
    %cst_10 = arith.constant 5.000000e-01 : f32
    %26 = vector.broadcast %cst_10 : f32 to vector<8x128xf32>
    %27 = arith.subf %20, %26 : vector<8x128xf32>
    %cst_11 = arith.constant 1.000000e+00 : f32
    %28 = vector.broadcast %cst_11 : f32 to vector<8x128xf32>
    %29 = arith.mulf %28, %27 : vector<8x128xf32>
    %30 = arith.select %22, %25, %29 : vector<8x128xi1>, vector<8x128xf32>
    %31 = arith.subf %6, %10 : vector<8x128xf32>
    %32 = math.absf %31 : vector<8x128xf32>
    %cst_12 = arith.constant 1.000000e+00 : f32
    %33 = vector.broadcast %cst_12 : f32 to vector<8x128xf32>
    %34 = arith.cmpf olt, %32, %33 : vector<8x128xf32>
    %cst_13 = arith.constant 5.000000e-01 : f32
    %35 = vector.broadcast %cst_13 : f32 to vector<8x128xf32>
    %36 = arith.mulf %35, %31 : vector<8x128xf32>
    %37 = arith.mulf %36, %31 : vector<8x128xf32>
    %cst_14 = arith.constant 5.000000e-01 : f32
    %38 = vector.broadcast %cst_14 : f32 to vector<8x128xf32>
    %39 = arith.subf %32, %38 : vector<8x128xf32>
    %cst_15 = arith.constant 1.000000e+00 : f32
    %40 = vector.broadcast %cst_15 : f32 to vector<8x128xf32>
    %41 = arith.mulf %40, %39 : vector<8x128xf32>
    %42 = arith.select %34, %37, %41 : vector<8x128xi1>, vector<8x128xf32>
    %c0_16 = arith.constant 0 : index
    %c0_17 = arith.constant 0 : index
    %c0_18 = arith.constant 0 : index
    %43 = vector.load %arg4[%c0_16, %c0_17, %c0_18] : memref<3x8x128xf32, #tpu.memory_space<vmem>>, vector<1x8x128xf32>
    %44 = vector.shape_cast %43 : vector<1x8x128xf32> to vector<8x128xf32>
    %45 = vector.shape_cast %18 : vector<8x128xf32> to vector<1x8x128xf32>
    %cst_19 = arith.constant dense<0.000000e+00> : vector<8x128xf32>
    %46 = vector.multi_reduction <add>, %45, %cst_19 [0] : vector<1x8x128xf32> to vector<8x128xf32>
    %47 = arith.addf %44, %46 : vector<8x128xf32>
    %c0_20 = arith.constant 0 : index
    %c0_21 = arith.constant 0 : index
    %c0_22 = arith.constant 0 : index
    %48 = vector.load %arg4[%c0_20, %c0_21, %c0_22] : memref<3x8x128xf32, #tpu.memory_space<vmem>>, vector<1x8x128xf32>
    %49 = vector.shape_cast %48 : vector<1x8x128xf32> to vector<8x128xf32>
    %50 = vector.shape_cast %47 : vector<8x128xf32> to vector<1x8x128xf32>
    tpu.vector_store %arg4[%c0_20, %c0_21, %c0_22], %50 {strides = array<i32>} : memref<3x8x128xf32, #tpu.memory_space<vmem>>, vector<1x8x128xf32>,
    %c1_23 = arith.constant 1 : index
    %c0_24 = arith.constant 0 : index
    %c0_25 = arith.constant 0 : index
    %51 = vector.load %arg4[%c1_23, %c0_24, %c0_25] : memref<3x8x128xf32, #tpu.memory_space<vmem>>, vector<1x8x128xf32>
    %52 = vector.shape_cast %51 : vector<1x8x128xf32> to vector<8x128xf32>
    %53 = vector.shape_cast %30 : vector<8x128xf32> to vector<1x8x128xf32>
    %cst_26 = arith.constant dense<0.000000e+00> : vector<8x128xf32>
    %54 = vector.multi_reduction <add>, %53, %cst_26 [0] : vector<1x8x128xf32> to vector<8x128xf32>
    %55 = arith.addf %52, %54 : vector<8x128xf32>
    %c1_27 = arith.constant 1 : index
    %c0_28 = arith.constant 0 : index
    %c0_29 = arith.constant 0 : index
    %56 = vector.load %arg4[%c1_27, %c0_28, %c0_29] : memref<3x8x128xf32, #tpu.memory_space<vmem>>, vector<1x8x128xf32>
    %57 = vector.shape_cast %56 : vector<1x8x128xf32> to vector<8x128xf32>
    %58 = vector.shape_cast %55 : vector<8x128xf32> to vector<1x8x128xf32>
    tpu.vector_store %arg4[%c1_27, %c0_28, %c0_29], %58 {strides = array<i32>} : memref<3x8x128xf32, #tpu.memory_space<vmem>>, vector<1x8x128xf32>,
    %c2_30 = arith.constant 2 : index
    %c0_31 = arith.constant 0 : index
    %c0_32 = arith.constant 0 : index
    %59 = vector.load %arg4[%c2_30, %c0_31, %c0_32] : memref<3x8x128xf32, #tpu.memory_space<vmem>>, vector<1x8x128xf32>
    %60 = vector.shape_cast %59 : vector<1x8x128xf32> to vector<8x128xf32>
    %61 = vector.shape_cast %42 : vector<8x128xf32> to vector<1x8x128xf32>
    %cst_33 = arith.constant dense<0.000000e+00> : vector<8x128xf32>
    %62 = vector.multi_reduction <add>, %61, %cst_33 [0] : vector<1x8x128xf32> to vector<8x128xf32>
    %63 = arith.addf %60, %62 : vector<8x128xf32>
    %c2_34 = arith.constant 2 : index
    %c0_35 = arith.constant 0 : index
    %c0_36 = arith.constant 0 : index
    %64 = vector.load %arg4[%c2_34, %c0_35, %c0_36] : memref<3x8x128xf32, #tpu.memory_space<vmem>>, vector<1x8x128xf32>
    %65 = vector.shape_cast %64 : vector<1x8x128xf32> to vector<8x128xf32>
    %66 = vector.shape_cast %63 : vector<8x128xf32> to vector<1x8x128xf32>
    tpu.vector_store %arg4[%c2_34, %c0_35, %c0_36], %66 {strides = array<i32>} : memref<3x8x128xf32, #tpu.memory_space<vmem>>, vector<1x8x128xf32>,
    %c0_i32_37 = arith.constant 0 : i32
    %67 = arith.cmpi eq, %arg1, %c0_i32_37 : i32
    %68 = arith.extui %67 : i1 to i32
    %c0_i32_38 = arith.constant 0 : i32
    %69 = arith.cmpi ne, %68, %c0_i32_38 : i32
    scf.if %69 {
      %c0_39 = arith.constant 0 : index
      %c0_40 = arith.constant 0 : index
      %c0_41 = arith.constant 0 : index
      %70 = vector.load %arg4[%c0_39, %c0_40, %c0_41] : memref<3x8x128xf32, #tpu.memory_space<vmem>>, vector<1x8x128xf32>
      %71 = vector.shape_cast %70 : vector<1x8x128xf32> to vector<8x128xf32>
      %cst_42 = arith.constant 5.000000e-01 : f32
      %72 = vector.broadcast %cst_42 : f32 to vector<8x128xf32>
      %73 = arith.mulf %72, %71 : vector<8x128xf32>
      %c1_43 = arith.constant 1 : index
      %c0_44 = arith.constant 0 : index
      %c0_45 = arith.constant 0 : index
      %74 = vector.load %arg4[%c1_43, %c0_44, %c0_45] : memref<3x8x128xf32, #tpu.memory_space<vmem>>, vector<1x8x128xf32>
      %75 = vector.shape_cast %74 : vector<1x8x128xf32> to vector<8x128xf32>
      %cst_46 = arith.constant 1.500000e-01 : f32
      %76 = vector.broadcast %cst_46 : f32 to vector<8x128xf32>
      %77 = arith.mulf %76, %75 : vector<8x128xf32>
      %78 = arith.addf %73, %77 : vector<8x128xf32>
      %c2_47 = arith.constant 2 : index
      %c0_48 = arith.constant 0 : index
      %c0_49 = arith.constant 0 : index
      %79 = vector.load %arg4[%c2_47, %c0_48, %c0_49] : memref<3x8x128xf32, #tpu.memory_space<vmem>>, vector<1x8x128xf32>
      %80 = vector.shape_cast %79 : vector<1x8x128xf32> to vector<8x128xf32>
      %cst_50 = arith.constant 3.500000e-01 : f32
      %81 = vector.broadcast %cst_50 : f32 to vector<8x128xf32>
      %82 = arith.mulf %81, %80 : vector<8x128xf32>
      %83 = arith.addf %78, %82 : vector<8x128xf32>
      %c0_51 = arith.constant 0 : index
      %c0_52 = arith.constant 0 : index
      %c0_53 = arith.constant 0 : index
      %84 = vector.load %arg3[%c0_51, %c0_52, %c0_53] : memref<1x8x128xf32, #tpu.memory_space<vmem>>, vector<1x8x128xf32>
      %85 = vector.shape_cast %84 : vector<1x8x128xf32> to vector<8x128xf32>
      %86 = vector.shape_cast %83 : vector<8x128xf32> to vector<1x8x128xf32>
      tpu.vector_store %arg3[%c0_51, %c0_52, %c0_53], %86 {strides = array<i32>} : memref<1x8x128xf32, #tpu.memory_space<vmem>>, vector<1x8x128xf32>,
    } else {
    }
    return
  }
  func.func @transform_0(%arg0: i32, %arg1: i32) -> (i32, i32, i32) {
    %c1_i32 = arith.constant 1 : i32
    %0 = arith.muli %arg0, %c1_i32 : i32
    %1 = arith.addi %0, %arg1 : i32
    %c0_i32 = arith.constant 0 : i32
    %c0_i32_0 = arith.constant 0 : i32
    %c0_i32_1 = arith.constant 0 : i32
    return %c0_i32, %1, %c0_i32_0 : i32, i32, i32
  }
  func.func @transform_1(%arg0: i32, %arg1: i32) -> (i32, i32, i32) {
    %c0_i32 = arith.constant 0 : i32
    %c0_i32_0 = arith.constant 0 : i32
    %c0_i32_1 = arith.constant 0 : i32
    return %arg0, %c0_i32, %c0_i32_0 : i32, i32, i32
  }
}

</mosaic_0001>

<bundles_post_ra>
// kernel: tpu_custom_call.1
= control target key start
LH: loop header
LB: loop body
LE: loop exit
PB: predicated region body
PF: predicated region fallthrough
CT: control target
= control target key end

     0   :  { %6 = vsyncpa [#allocation4], 0  ;;  %s277_s0 = inlined_call_operand.hbm [shape: f32[4,8,128], index: 0, kind: input, shape index: {}]   ;;  %s278_s1 = inlined_call_operand.hbm [shape: f32[1,8,128], index: 1, kind: output, shape index: {}]  }
   0x1   :  { %7 = vsyncpa [#allocation5], 0  ;;  %s15_s8 = sshll.u32 %s277_s0, 4  ;;  %s229_s9 = smov [#allocation3]   ;;  %s16_s8 = int_to_ptr.hbm [resolvable:$true] %s15_s8 }
   0x2   :  { %s17_s10 = sshll.u32 %s229_s9, 4  ;;  %s230_s11 = smov 128   ;;  %s18_s10 = int_to_ptr.vmem [resolvable:$true] %s17_s10 }
   0x3   :  { %s231_s12 = smov 8  }
   0x4   :  { %23 = dma.hbm_to_vmem [thread:$0]  %s16_s8, 512, %s18_s10, [#allocation4], %s230_s11, %s230_s11, %s231_s12  }
   0x5   :  { %225 = dma.done.wait [#allocation4], 512  }
   0x6   :  { %226 = vsyncadd [#allocation4], 4294966784  ;;  %v36_v0 = vld [vmem:[#allocation3] sm:$0xff]  ;;  %v38_v1 = vld [vmem:[#allocation3 + $0x8] sm:$0xff]  ;;  %v232_v52 = vmov 0.0   ;;  %s234_s0 = smov [#allocation6]  }
   0x7   :  { %v40_v2 = vld [vmem:[#allocation3 + $0x10] sm:$0xff]  ;;  %v42_v3 = vld [vmem:[#allocation3 + $0x18] sm:$0xff]  ;;  %v233_v57 = vmov 0.7853982   ;;  %s155_s13 = sshll.u32 %s234_s0, 4  ;;  %s157_s16 = sshll.u32 %s278_s1, 4  ;;  %s156_s13 = int_to_ptr.vmem [resolvable:$true] %s155_s13  ;;  %s158_s16 = int_to_ptr.hbm [resolvable:$true] %s157_s16 }
   0x8   :  { %v43_v4 = vmul.f32 %v40_v2, %v38_v1  ;;  %v46_v5 = vmul.f32 %v40_v2, %v36_v0  ;;  %v44_v6 = vmul.f32 %v42_v3, %v36_v0  ;;  %v47_v7 = vmul.f32 %v42_v3, %v38_v1 }
   0x9   :  { %v110_v34 = vsub.f32 %v36_v0, %v40_v2  ;;  %v117_v36 = vsub.f32 %v38_v1, %v42_v3 }
   0xa   :  { %v248_v8 = vsub.f32 %v43_v4, %v44_v6  ;;  %v250_v9 = vadd.f32 %v47_v7, %v46_v5 }
   0xb   :  { %v111_v49 = vand.u32 2147483647, %v110_v34  ;;  %v113_v50 = vmul.f32 0.5, %v110_v34  ;;  %v118_v54 = vand.u32 2147483647, %v117_v36  ;;  %v120_v55 = vmul.f32 0.5, %v117_v36 }
   0xc   :  { %v49_v10 = vand.u32 2147483647, %v250_v9  ;;  %v50_v11 = vand.u32 2147483647, %v248_v8  ;;  %vm96_vm4 = vcmp.ne.f32.partialorder %v250_v9, %v250_v9  ;;  %vm97_vm5 = vcmp.ne.f32.partialorder %v248_v8, %v248_v8 }
   0xd   :  { %vm258_vm6 = vmor %vm96_vm4, %vm97_vm5  ;;  %vm92_vm11 = vcmp.lt.s32.totalorder %v250_v9, 0  ;;  %vm89_vm12 = vcmp.lt.f32.partialorder %v250_v9, 0.0  ;;  %vm94_vm13 = vcmp.eq.f32.partialorder %v248_v8, 0.0  ;;  %v114_v60 = vmul.f32 %v113_v50, %v110_v34 }
   0xe   :  { %v52_v12 = vmax.f32 %v49_v10, %v50_v11  ;;  %v51_v20 = vmin.f32 %v49_v10, %v50_v11  ;;  %vm102_vm7 = vcmp.eq.s32.totalorder %v49_v10, inf  ;;  %vm103_vm8 = vcmp.eq.s32.totalorder %v50_v11, inf }
   0xf   :  { %vm262_vm9 = vmand %vm102_vm7, %vm103_vm8  ;;  %vm86_vm10 = vcmp.gt.f32.partialorder %v50_v11, %v49_v10  ;;  %v93_v53 = vsel %vm92_vm11, 3.1415927, %v232_v52  ;;  %v101_v58 = vsel %vm89_vm12, 2.3561945, %v233_v57  ;;  %v167_v61 = vadd.f32 -0.5, %v111_v49 }
  0x10   :  { %175 = vrcp.f32 %v52_v12  ;;  %v64_v15 = vand.u32 2147483648, %v52_v12  ;;  %vm58_vm0 = vweird.f32 %v52_v12  ;;  %v62_v17 = vand.u32 2147483647, %v52_v12 }
  0x11   :  { %v107_v63 = vand.u32 2147483648, %v248_v8  ;;  %vm112_vm14 = vcmp.lt.f32.partialorder %v111_v49, 1.0  ;;  %v121_v1 = vmul.f32 %v120_v55, %v117_v36  ;;  %v168_v2 = vadd.f32 -0.5, %v118_v54 }
  0x12   :  { %v65_v19 = vor.u32 1.1754944e-38, %v64_v15  ;;  %vm63_vm3 = vcmp.eq.f32.partialorder %v62_v17, 8.507059e+37  ;;  %vm119_vm15 = vcmp.lt.f32.partialorder %v118_v54, 1.0  ;;  %v116_v4 = vsel %vm112_vm14, %v114_v60, %v167_v61 }
  0x13   :  { %v123_v6 = vsel %vm119_vm15, %v121_v1, %v168_v2  ;;  %v144_v9 = vmul.f32 0.15, %v116_v4 }
  0x14   :  { %v147_v11 = vmul.f32 0.35, %v123_v6 }
  0x16   :  { %v176_v13 = vpop.eup %175 }
  0x17   :  { %v54_v14 = vmul.f32 %v176_v13, %v52_v12  ;;  %vm59_vm1 = vweird.f32 %v176_v13 }
  0x18   :  { %vm60_vm2 = vmor %vm58_vm0, %vm59_vm1 }
  0x19   :  { %v55_v16 = vsub.f32 1.0, %v54_v14 }
  0x1b   :  { %v56_v18 = vmul.f32 %v176_v13, %v55_v16 }
  0x1d   :  { %v57_v21 = vadd.f32 %v176_v13, %v56_v18 }
  0x1f   :  { %v61_v22 = vsel %vm60_vm2, %v176_v13, %v57_v21 }
  0x20   :  { %v66_v23 = vsel %vm63_vm3, %v65_v19, %v61_v22 }
  0x21   :  { %v67_v24 = vmul.f32 %v66_v23, %v51_v20 }
  0x23   :  { %v68_v25 = vmul.f32 %v67_v24, %v67_v24 }
  0x25   :  { %v69_v26 = vmul.f32 0.002785687, %v68_v25 }
  0x27   :  { %v70_v27 = vadd.f32 -0.015866, %v69_v26 }
  0x29   :  { %v71_v28 = vmul.f32 %v70_v27, %v68_v25 }
  0x2b   :  { %v72_v29 = vadd.f32 0.04247222, %v71_v28 }
  0x2d   :  { %v73_v30 = vmul.f32 %v72_v29, %v68_v25 }
  0x2f   :  { %v74_v33 = vadd.f32 -0.074975304, %v73_v30 }
  0x31   :  { %v75_v35 = vmul.f32 %v74_v33, %v68_v25 }
  0x33   :  { %v76_v37 = vadd.f32 0.1064488, %v75_v35 }
  0x35   :  { %v77_v38 = vmul.f32 %v76_v37, %v68_v25 }
  0x37   :  { %v78_v39 = vadd.f32 -0.14207031, %v77_v38 }
  0x39   :  { %v79_v40 = vmul.f32 %v78_v39, %v68_v25 }
  0x3b   :  { %v80_v41 = vadd.f32 0.19993454, %v79_v40 }
  0x3d   :  { %v81_v42 = vmul.f32 %v80_v41, %v68_v25 }
  0x3f   :  { %v82_v43 = vadd.f32 -0.33333147, %v81_v42 }
  0x41   :  { %v83_v44 = vmul.f32 %v82_v43, %v68_v25 }
  0x43   :  { %v84_v45 = vmul.f32 %v83_v44, %v67_v24 }
  0x45   :  { %v85_v46 = vadd.f32 %v84_v45, %v67_v24 }
  0x47   :  { %v87_v47 = vsub.f32 1.5707964, %v85_v46 }
  0x49   :  { %v88_v48 = vsel %vm86_vm10, %v87_v47, %v85_v46 }
  0x4a   :  { %v90_v51 = vsub.f32 3.1415927, %v88_v48 }
  0x4c   :  { %v91_v56 = vsel %vm89_vm12, %v90_v51, %v88_v48 }
  0x4d   :  { %v95_v59 = vsel %vm94_vm13, %v93_v53, %v91_v56 }
  0x4e   :  { %v99_v62 = vsel %vm258_vm6, nan, %v95_v59 }
  0x4f   :  { %v105_v0 = vsel %vm262_vm9, %v101_v58, %v99_v62 }
  0x50   :  { %v106_v3 = vand.u32 2147483647, %v105_v0 }
  0x52   :  { %v108_v5 = vor.u32 %v107_v63, %v106_v3 }
  0x54   :  { %v109_v7 = vand.u32 2147483647, %v108_v5 }
  0x56   :  { %v142_v10 = vmul.f32 0.5, %v109_v7 }
  0x58   :  { %v145_v8 = vadd.f32 %v144_v9, %v142_v10 }
  0x5a   :  { %v148_v12 = vadd.f32 %v147_v11, %v145_v8 }
  0x5c   :  { %149 = vst [vmem:[#allocation6] sm:$0xff] %v148_v12 }
  0x5d   :  { %160 = dma.vmem_to_hbm [thread:$0]  %s156_s13, 128, %s158_s16, [#allocation5]  }
  0x5e   :  { %227 = dma.done.wait [#allocation5], 128  }
  0x5f   :  { %228 = vsyncadd [#allocation5], 4294967168 }
  0x60   :  { %165 = vsyncpa [#allocation4], 1 }
  0x61   :  { %166 = vsyncpa [#allocation5], 1 }

</bundles_post_ra>
